<compile_context>
chip_gen: v5e
topology: v5e:2x2
jax: 0.10.0
libtpu: 0.0.40
codegen_flags: <defaults>
</compile_context>

<pallas_src>
import math
import functools

import jax
import jax.numpy as jnp
from jax.experimental import pallas as pl
from jax.experimental.pallas import tpu as pltpu


def _round_up(x, m):
    return ((x + m - 1) // m) * m


def _choose_from_ladder(dim, ladder):
    """Pick the tile from `ladder` minimizing round-up padding (prefer larger)."""
    best_tile, best_pad = None, None
    for c in ladder:
        pad = _round_up(dim, c)
        if best_pad is None or pad < best_pad or (pad == best_pad and c > best_tile):
            best_tile, best_pad = c, pad
    return best_tile


def _vmem_budget():
    """~75% of physical VMEM; conservative 64 MiB (v7x-safe) fallback."""
    cap = 64 * 1024 * 1024
    try:
        info = pltpu.get_tpu_info()
        cap = int(getattr(info, "vmem_capacity_bytes", cap)) or cap
    except Exception:
        pass
    return max(32 * 1024 * 1024, min(int(cap * 0.75), 112 * 1024 * 1024))


# ----------------------------------------------------------------------------
# Kernels
# ----------------------------------------------------------------------------
def _rks_kernel_single(x_ref, g_ref, u_ref, o_ref, *, nonlinearity, out_scale):
    """Whole contraction in one block: (tm, K) @ (K, tn) -> (tm, tn)."""
    acc = jnp.dot(x_ref[...], g_ref[...], preferred_element_type=jnp.float32)
    if nonlinearity:
        acc = jnp.cos(acc + u_ref[...]) * out_scale   # (1, tn) broadcast over rows
    o_ref[...] = acc.astype(o_ref.dtype)


def _rks_kernel_multi(x_ref, g_ref, u_ref, o_ref, acc_ref, *, nonlinearity, out_scale):
    """Tiled contraction: accumulate over the (last, 'arbitrary') k grid axis."""
    k = pl.program_id(2)

    @pl.when(k == 0)
    def _():
        acc_ref[...] = jnp.zeros_like(acc_ref)

    acc_ref[...] += jnp.dot(x_ref[...], g_ref[...], preferred_element_type=jnp.float32)

    @pl.when(k == pl.num_programs(2) - 1)
    def _():
        acc = acc_ref[...]
        if nonlinearity:
            acc = jnp.cos(acc + u_ref[...]) * out_scale
        o_ref[...] = acc.astype(o_ref.dtype)


# ----------------------------------------------------------------------------
# Layer wrapper
# ----------------------------------------------------------------------------
_TN_LADDER = (1024, 768, 512, 384, 256, 128)    # lane tiles (multiples of 128)
_TK_LADDER = (2048, 1536, 1024, 768, 512, 384, 256, 128)
_MAX_TM = 2048                                   # upper cap on rows per tile


class RKSPallas:
    """Random Kitchen Sink layer: cos(x @ G + U) * sqrt(2/N)  (or just x @ G)."""

    def __init__(self, G, U, *, nonlinearity=True, compute_dtype=jnp.bfloat16):
        K, N = G.shape
        self.K, self.N = int(K), int(N)
        self.nonlinearity = bool(nonlinearity)
        self.out_scale = math.sqrt(2.0 / self.N)
        self.compute_dtype = jnp.dtype(compute_dtype)
        self.budget = _vmem_budget()

        # ---- N tiling: padding-aware ladder (lane-dense, 128-multiples) ----
        self.tn = _choose_from_ladder(self.N, _TN_LADDER)
        self.N_pad = _round_up(self.N, self.tn)

        # ---- K tiling: whole contraction in one block if the G tile fits ----
        ib = self.compute_dtype.itemsize
        g_block_bytes = 2 * self.K * self.tn * ib          # double-buffered G tile
        self.single_k = g_block_bytes <= self.budget // 2
        if self.single_k:
            self.tk = self.K
            self.K_pad = self.K
        else:
            self.tk = _choose_from_ladder(self.K, _TK_LADDER)
            self.K_pad = _round_up(self.K, self.tk)

        # ---- pad + cast the fixed parameters ONCE (off the hot path) ----
        Gp = jnp.asarray(G)
        if (self.K_pad, self.N_pad) != (self.K, self.N):
            Gp = jnp.pad(Gp, ((0, self.K_pad - self.K), (0, self.N_pad - self.N)))
        self.Gp = Gp.astype(self.compute_dtype)
        Up = jnp.asarray(U, dtype=jnp.float32)
        if self.N_pad != self.N:
            Up = jnp.pad(Up, (0, self.N_pad - self.N))
        self.U2d = Up.reshape(1, self.N_pad)

        self._plans = {}

    # -- per-batch-size tiling plan (cached) ---------------------------------
    def _plan(self, M, out_itemsize):
        key = (M, out_itemsize)
        if key in self._plans:
            return self._plans[key]
        ib = self.compute_dtype.itemsize
        ob = out_itemsize
        tn = self.tn
        if self.single_k:
            fixed = 2 * self.K_pad * tn * ib + 2 * tn * 4
            per_row = 2 * self.K_pad * ib + 2 * tn * ob
        else:
            fixed = 2 * self.tk * tn * ib + 2 * tn * 4
            per_row = 2 * self.tk * ib + 2 * tn * ob + tn * 4   # + f32 accumulator
        tm_budget = max((self.budget - fixed) // per_row, 16)
        tm = min(_round_up(M, 16), (int(tm_budget) // 16) * 16, _MAX_TM)
        tm = max(tm, 16)
        M_pad = _round_up(M, tm)
        grid_i = M_pad // tm
        grid_j = self.N_pad // tn

        # v7x megacore: guarantee >= 2 "parallel" blocks whenever splittable.
        if grid_i * grid_j < 2:
            if self.N_pad >= 256:
                tn = self.N_pad // 2        # halves of ladder tiles stay 128-aligned
                grid_j = 2
            elif M_pad >= 32:
                tm = 16
                grid_i = M_pad // 16

        plan = (tm, tn, M_pad, grid_i, grid_j)
        self._plans[key] = plan
        return plan

    # -- forward --------------------------------------------------------------
    def __call__(self, x):
        M, K = x.shape
        assert K == self.K, "input feature dim mismatch"
        out_dtype = x.dtype
        tm, tn, M_pad, grid_i, grid_j = self._plan(int(M), jnp.dtype(out_dtype).itemsize)

        xp = x
        if M_pad != M:
            xp = jnp.pad(x, ((0, M_pad - M), (0, 0)))
        xp = xp.astype(self.compute_dtype)

        # Stream the larger operand (usually G) exactly once: its grid axis is
        # outermost, so its block index is constant across the inner sweep.
        j_outer = self.N_pad >= M_pad

        if self.single_k:
            kernel = functools.partial(
                _rks_kernel_single,
                nonlinearity=self.nonlinearity, out_scale=self.out_scale)
            if j_outer:
                grid = (grid_j, grid_i)
                x_map = lambda a, b: (b, 0)
                g_map = lambda a, b: (0, a)
                u_map = lambda a, b: (0, a)
                o_map = lambda a, b: (b, a)
            else:
                grid = (grid_i, grid_j)
                x_map = lambda a, b: (a, 0)
                g_map = lambda a, b: (0, b)
                u_map = lambda a, b: (0, b)
                o_map = lambda a, b: (a, b)
            in_specs = [
                pl.BlockSpec((tm, self.K_pad), x_map),
                pl.BlockSpec((self.K_pad, tn), g_map),
                pl.BlockSpec((1, tn), u_map),
            ]
            out_specs = pl.BlockSpec((tm, tn), o_map)
            scratch_shapes = []
            dims = ("parallel", "parallel")
        else:
            kernel = functools.partial(
                _rks_kernel_multi,
                nonlinearity=self.nonlinearity, out_scale=self.out_scale)
            kt = self.K_pad // self.tk
            if j_outer:
                grid = (grid_j, grid_i, kt)
                x_map = lambda a, b, k: (b, k)
                g_map = lambda a, b, k: (k, a)
                u_map = lambda a, b, k: (0, a)
                o_map = lambda a, b, k: (b, a)
            else:
                grid = (grid_i, grid_j, kt)
                x_map = lambda a, b, k: (a, k)
                g_map = lambda a, b, k: (k, b)
                u_map = lambda a, b, k: (0, b)
                o_map = lambda a, b, k: (a, b)
            in_specs = [
                pl.BlockSpec((tm, self.tk), x_map),
                pl.BlockSpec((self.tk, tn), g_map),
                pl.BlockSpec((1, tn), u_map),
            ]
            out_specs = pl.BlockSpec((tm, tn), o_map)
            scratch_shapes = [pltpu.VMEM((tm, tn), jnp.float32)]
            dims = ("parallel", "parallel", "arbitrary")   # reduction axis last

        out = pl.pallas_call(
            kernel,
            out_shape=jax.ShapeDtypeStruct((M_pad, self.N_pad), out_dtype),
            grid_spec=pltpu.PrefetchScalarGridSpec(
                num_scalar_prefetch=0,
                grid=grid,
                in_specs=in_specs,
                out_specs=out_specs,
                scratch_shapes=scratch_shapes,
            ),
            compiler_params=pltpu.CompilerParams(
                dimension_semantics=dims,
                vmem_limit_bytes=self.budget,
            ),
        )(xp, self.Gp, self.U2d)

        if (M_pad, self.N_pad) != (M, self.N):
            out = out[:M, :self.N]
        return out


# ----------------------------------------------------------------------------
# Demo / correctness check
# ----------------------------------------------------------------------------
if __name__ == "__main__":
    key = jax.random.PRNGKey(0)

    def run_case(batch, input_dim, output_dim, scale, nonlinearity, case_key):
        kx, kg, ku = jax.random.split(case_key, 3)
        x = jax.random.normal(kx, (batch, input_dim), dtype=jnp.float32)
        # Deterministic "random" parameters matching the module's __init__ / phi:
        #   G ~ (1/scale) * N(0, 1) of shape (input_dim, output_dim)
        #   U ~ 2*pi * Uniform[0, 1) of shape (output_dim,)
        # TODO(synk): the PyTorch phi() resamples U every forward call; here U is
        # a fixed input vector (deterministic kernel semantics).
        G = (1.0 / scale) * jax.random.normal(
            kg, (input_dim, output_dim), dtype=jnp.float32)
        U = 2.0 * jnp.pi * jax.random.uniform(ku, (output_dim,), dtype=jnp.float32)

        layer = RKSPallas(G, U, nonlinearity=nonlinearity)
        out = jax.block_until_ready(layer(x))

        # Reference with the same bf16 inputs / f32 accumulation the MXU uses.
        ref = jnp.dot(x.astype(jnp.bfloat16), G.astype(jnp.bfloat16),
                      preferred_element_type=jnp.float32)
        if nonlinearity:
            ref = jnp.cos(ref + U[None, :]) * math.sqrt(2.0 / output_dim)

        assert out.shape == (batch, output_dim)
        assert out.dtype == x.dtype
        assert jnp.allclose(out, ref, atol=2e-2, rtol=2e-2), "mismatch vs reference"

    k1, k2, k3 = jax.random.split(key, 3)
    # Small shapes consistent with the module: (batch, input_dim) -> (batch, output_dim)
    run_case(batch=16, input_dim=64, output_dim=256, scale=1.0,
             nonlinearity=True, case_key=k1)
    # Non-tile-multiple shapes -> exercises the padding path.
    run_case(batch=13, input_dim=50, output_dim=200, scale=2.0,
             nonlinearity=True, case_key=k2)
    # Linear-only path (nonlinearity=False).
    run_case(batch=16, input_dim=64, output_dim=256, scale=1.0,
             nonlinearity=False, case_key=k3)

    print("KERNEL_OK")
</pallas_src>

<mosaic_0001>
module attributes {stable_mosaic.version = 11 : i64} {
  func.func @_rks_kernel_single(%arg0: i32, %arg1: i32, %arg2: memref<16x64xbf16, #tpu.memory_space<vmem>>, %arg3: memref<64x128xbf16, #tpu.memory_space<vmem>>, %arg4: memref<1x128xf32, #tpu.memory_space<vmem>>, %arg5: memref<16x128xf32, #tpu.memory_space<vmem>>) attributes {dimension_semantics = [#tpu.dimension_semantics<parallel>, #tpu.dimension_semantics<parallel>], iteration_bounds = array<i64: 2, 1>, scalar_prefetch = 0 : i64, scratch_operands = 0 : i64, tpu.core_type = #tpu.core_type<tc>, window_params = [{transform_indices = @transform_0, window_bounds = array<i64: 16, 64>}, {transform_indices = @transform_1, window_bounds = array<i64: 64, 128>}, {transform_indices = @transform_2, window_bounds = array<i64: 1, 128>}, {transform_indices = @transform_3, window_bounds = array<i64: 16, 128>}]} {
    %c0 = arith.constant 0 : index
    %c0_0 = arith.constant 0 : index
    %0 = vector.load %arg2[%c0, %c0_0] : memref<16x64xbf16, #tpu.memory_space<vmem>>, vector<16x64xbf16>
    %c0_1 = arith.constant 0 : index
    %c0_2 = arith.constant 0 : index
    %1 = vector.load %arg3[%c0_1, %c0_2] : memref<64x128xbf16, #tpu.memory_space<vmem>>, vector<64x128xbf16>
    %cst = arith.constant dense<0.000000e+00> : vector<16x128xf32>
    %2 = tpu.matmul %0, %1, %cst {dimension_numbers = #tpu.dot_dimension_numbers<[1], [0], [0], [1], [0, 0, 1, 1], [], []>} : vector<16x64xbf16>, vector<64x128xbf16>, vector<16x128xf32> -> vector<16x128xf32>
    %c0_3 = arith.constant 0 : index
    %c0_4 = arith.constant 0 : index
    %3 = vector.load %arg4[%c0_3, %c0_4] : memref<1x128xf32, #tpu.memory_space<vmem>>, vector<1x128xf32>
    %4 = vector.broadcast %3 : vector<1x128xf32> to vector<16x128xf32>
    %5 = arith.addf %2, %4 : vector<16x128xf32>
    %6 = math.cos %5 : vector<16x128xf32>
    %cst_5 = arith.constant 0.0883883461 : f32
    %7 = vector.broadcast %cst_5 : f32 to vector<16x128xf32>
    %8 = arith.mulf %6, %7 : vector<16x128xf32>
    %c0_6 = arith.constant 0 : index
    %c0_7 = arith.constant 0 : index
    %9 = vector.load %arg5[%c0_6, %c0_7] : memref<16x128xf32, #tpu.memory_space<vmem>>, vector<16x128xf32>
    tpu.vector_store %arg5[%c0_6, %c0_7], %8 {strides = array<i32>} : memref<16x128xf32, #tpu.memory_space<vmem>>, vector<16x128xf32>,
    return
  }
  func.func @transform_0(%arg0: i32, %arg1: i32) -> (i32, i32) {
    %c0_i32 = arith.constant 0 : i32
    %c0_i32_0 = arith.constant 0 : i32
    return %arg1, %c0_i32 : i32, i32
  }
  func.func @transform_1(%arg0: i32, %arg1: i32) -> (i32, i32) {
    %c0_i32 = arith.constant 0 : i32
    %c0_i32_0 = arith.constant 0 : i32
    return %c0_i32, %arg0 : i32, i32
  }
  func.func @transform_2(%arg0: i32, %arg1: i32) -> (i32, i32) {
    %c0_i32 = arith.constant 0 : i32
    %c0_i32_0 = arith.constant 0 : i32
    return %c0_i32, %arg0 : i32, i32
  }
  func.func @transform_3(%arg0: i32, %arg1: i32) -> (i32, i32) {
    %c0_i32 = arith.constant 0 : i32
    return %arg1, %arg0 : i32, i32
  }
}

</mosaic_0001>

<bundles_post_ra>
// kernel: tpu_custom_call.1
= control target key start
LH: loop header
LB: loop body
LE: loop exit
PB: predicated region body
PF: predicated region fallthrough
CT: control target
= control target key end

     0   :  { %8 = vsyncpa [#allocation3], 0  ;;  %s1454_s0 = inlined_call_operand.hbm [shape: bf16[16,64], index: 0, kind: input, shape index: {}]   ;;  %s1455_s1 = inlined_call_operand.hbm [shape: bf16[64,256], index: 1, kind: input, shape index: {}]   ;;  %s1456_s2 = inlined_call_operand.hbm [shape: f32[1,256], index: 2, kind: input, shape index: {}]   ;;  %s1457_s3 = inlined_call_operand.hbm [shape: f32[16,256], index: 3, kind: output, shape index: {}]  }
   0x1   :  { %9 = vsyncpa [#allocation6], 0 }
   0x2   :  { %11 = vsyncpa [#allocation6 + $0x1], 0 }
   0x3   :  { %12 = vsyncpa [#allocation4], 0 }
   0x4   :  { %14 = vsyncpa [#allocation4 + $0x1], 0  ;;  %s1119_s12 = smov 0   ;;  %s1121_s13 = smov 0  }
   0x5   :  { %s1123_s14 = smov 0   ;;  %s1125_s15 = smov 0  }
   0x6   :  { %s1127_s16 = smov 0   ;;  %s1129_s17 = smov 0  }
   0x7 LB: > { %s32_s18 = sadd.s32 1, %s1079_s16  ;;  %s65_s19 = sadd.s32 1, %s1071_s14  ;;  %s1083_s17 = sphi %s1129_s17, %s20_s17   ;;  %s1079_s16 = sphi %s1127_s16, %s1472_s16   ;;  %s1075_s15 = sphi %s1125_s15, %s1471_s15   ;;  %s1071_s14 = sphi %s1123_s14, %s1470_s14   ;;  %s1067_s13 = sphi %s1121_s13, %s1469_s13   ;;  %s1063_s12 = sphi %s1119_s12, %s1468_s12  }
   0x8   : > { %p34_p0 = scmp.ge.s32.totalorder %s32_s18, 2  ;;  %p72_p1 = scmp.ne.s32.totalorder %s1071_s14, %s1067_s13 }
   0x9   : > { %p73_p2 = scmp.eq.s32.totalorder %s1083_s17, 0  ;;  %p772_p4 = scmp.ge.s32.totalorder %s1083_s17, 2 }
   0xa   : > { %s1474_s18 = smov (%p34_p0, %s32_s18), 0  ;;  %p841_p6 = scmp.lt.s32.totalorder %s1083_s17, 2 }
   0xb   : > { %p1159_p3 = por %p73_p2, %p72_p1  ;;  %s62_s21 = ssub.s32 %s1079_s16, %s1474_s18 }
   0xc   : > { %p63_p5 = scmp.eq.s32.totalorder %s62_s21, 0  ;;  %s173_s22 = sand.u32 1, %s1083_s17  }
   0xd   : > { %s175_s23 = sand.u32 1, %s1071_s14   ;;  %s774_s26 = sshll.u32 %s1079_s16, 2 }
   0xe   : > { %s1170_s24 = scalar_select %p63_p5, %s1071_s14, %s65_s19  }
   0xf   : > { %s773_s25 = sshll.u32 %s175_s23, 5  ;;  %s181_s29 = scalar_lea.hbm %s1455_s1, %s774_s26 }
  0x10   : > { %s177_s30 = scalar_lea.vmem [#allocation5], %s773_s25  ;;  %s182_s5 = sshll.u32 %s181_s29, 4  ;;  %s183_s5 = int_to_ptr.hbm [resolvable:$true] %s182_s5 }
  0x11   : > { %s184_s4 = sshll.u32 %s177_s30, 4  ;;  %p1180_p7 = pnand %p841_p6, %p1159_p3  ;;  %s185_s4 = int_to_ptr.vmem [resolvable:$true] %s184_s4 }
  0x12   : > { %s1184_s7 = scalar_lea.sflag [#allocation6], %s173_s22  ;;  %s1085_s8 = smov 128  }
  0x13   : > { %s1086_s9 = smov 64   ;;  %s1087_s10 = smov 4  }
  0x14   : > { %832 = dma.hbm_to_vmem [thread:$0]  (!%p1180_p7), %s183_s5, 512, %s185_s4, %s1184_s7, %s1085_s8, %s1086_s9, %s1087_s10  }
  0x15   : > { %s1192_s11 = sadd.s32 4294967295, %s1083_s17   ;;  %s769_s19 = sadd.s32 4294967294, %s1083_s17  }
  0x16   : > { %p78_p8 = scmp.ne.s32.totalorder %s1067_s13, %s1063_s12  ;;  %p79_p9 = scmp.eq.s32.totalorder %s1192_s11, 0 }
  0x17   : > { %p130_p10 = scmp.eq.s32.totalorder %s1192_s11, 1  ;;  %p136_p11 = scmp.eq.s32.totalorder %s769_s19, 1 }
  0x18   : > { %p1201_p12 = por %p79_p9, %p78_p8  ;;  %p770_p13 = scmp.ge.s32.totalorder %s1083_s17, 1 }
  0x19   : > { %p1209_p0 = por %p130_p10, %p72_p1  ;;  %p1213_p2 = por %p136_p11, %p78_p8 }
  0x1a   : > { %p143_p3 = scmp.lt.s32.totalorder %s1083_s17, 3  ;;  %s157_s27 = sshll.u32 %s1454_s0, 4  ;;  %s158_s27 = int_to_ptr.hbm [resolvable:$true] %s157_s27 }
  0x1b   : > { %s1088_s29 = smov [#allocation2]   ;;  %s200_s8 = scalar_lea.hbm %s1456_s2, %s1079_s16 }
  0x1c   : > { %p1221_p5 = pnand %p770_p13, %p143_p3  ;;  %s159_s30 = sshll.u32 %s1088_s29, 4  ;;  %s160_s30 = int_to_ptr.vmem [resolvable:$true] %s159_s30 }
  0x1d   : > { %s197_s19 = scalar_lea.vmem [#allocation7], %s175_s23  ;;  %s202_s26 = sshll.u32 %s200_s8, 4  ;;  %s203_s26 = int_to_ptr.hbm [resolvable:$true] %s202_s26 }
  0x1e   : > { %p825_p1 = pneg %p1221_p5  ;;  %s204_s25 = sshll.u32 %s197_s19, 4  ;;  %s205_s25 = int_to_ptr.vmem [resolvable:$true] %s204_s25 }
  0x1f   : > { %835 = dma.hbm_to_vmem [thread:$0]  (!%p1180_p7), %s203_s26, 16, %s205_s25, %s1184_s7  }
  0x20   : > { %p826_p6 = pnand %p825_p1, %p79_p9  ;;  %213 = sbr.rel (%p1221_p5) target bundleno = 309 (0x135), region = 32 }
  0x22   : > { %828 = dma.hbm_to_vmem [thread:$0]  (!%p826_p6), %s158_s27, 128, %s160_s30, [#allocation3], %s1086_s9, %s1086_s9, %s1087_s10  }
  0x25   : > { %1050 = dma.done.wait (%p79_p9), [#allocation3], 128  }
  0x26   : > { %1052 = vsyncadd (%p79_p9), [#allocation3], 4294967168  ;;  %s220_s23 = sand.u32 1, %s1192_s11   ;;  %s1249_s29 = sand.u32 1, %s1067_s13  }
  0x27   : > { %s777_s4 = sshll.u32 %s1249_s29, 5  ;;  %s221_s9 = scalar_lea.sflag [#allocation6], %s220_s23 }
  0x28   : > { %s224_s6 = scalar_lea.vmem [#allocation5], %s777_s4 }
  0x29   : > { %1054 = dma.done.wait (%p1201_p12), %s221_s9, 528  }
  0x2a   : > { %1056 = vsyncadd (%p1201_p12), %s221_s9, 4294966768  ;;  %v814_v0 = vld [vmem:[%s224_s6 + $0x18] sm:$0xff]  ;;  %s233_s7 = scalar_lea.vmem [#allocation7], %s1249_s29  ;;  %v813_v1 = vld [vmem:[%s224_s6 + $0x10] sm:$0xff]  ;;  %vm307_vm0 = vcmask 523264   ;;  %s778_s10 = sshll.u32 %s1249_s29, 4 }
  0x2b   : > { %315 = vmatpush.bf16.msra.mxu0 %v814_v0  ;;  %v812_v2 = vld [vmem:[%s224_s6 + $0x8] sm:$0xff]  ;;  %v811_v3 = vld [vmem:[%s224_s6] sm:$0xff]  ;;  %v810_v4 = vld [vmem:[#allocation2] sm:$0xff]  ;;  %v1089_v27 = vmov 683565275   ;;  %s1397_s11 = scalar_lea.vmem [#allocation8], %s778_s10 }
  0x2c   : > { %v906_v5 = vld [vmem:[%s233_s7] ss:$0 sm:$0xff]  ;;  %v1090_v29 = vmov 2475754826   ;;  %v1091_v33 = vmov 2131351028  }
  0x2d   : > { %v1092_v36 = vmov 2102212464   ;;  %v1093_v39 = vmov 920167782   ;;  %v1094_v42 = vmov 1326507024  }
  0x2e   : > { %s807_s20 = sshll.u32 %s1075_s15, 3  ;;  %s652_s5 = sshll.u32 %s1397_s11, 4  ;;  %s653_s5 = int_to_ptr.vmem [resolvable:$true] %s652_s5 }
  0x2f   : > { %316 = vmatpush.bf16.msra.mxu0 %v813_v1  ;;  %s651_s30 = scalar_lea.hbm %s1457_s3, %s807_s20  ;;  %s638_s15 = scalar_lea.sflag [#allocation4], %s1249_s29 }
  0x30   : > { %s654_s8 = sshll.u32 %s651_s30, 4  ;;  %s1017_s4 = scalar_lea.hbm %s1457_s3, 32  ;;  %s655_s8 = int_to_ptr.hbm [resolvable:$true] %s654_s8 }
  0x31   : > { %s1011_s19 = sshra.s32 %s655_s8, 4  ;;  %s1012_s19 = int_to_ptr.hbm [resolvable:$true] %s1011_s19 }
  0x32   : > { %s1013_s25 = scalar_lea.hbm %s1012_s19, 16  ;;  %p1018_p10 = scmp.lt.s32.totalorder %s1012_s19, %s1457_s3 }
  0x33   : > { %317 = vmatpush.bf16.msra.mxu0 %v812_v2  ;;  %p1014_p7 = scmp.ne.s32.totalorder %s1012_s19, %s1013_s25  ;;  %p1019_p11 = scmp.lt.s32.totalorder %s1017_s4, %s1013_s25 }
  0x35   : > { %p1015_p8 = pnand %p1014_p7, %p1209_p0  ;;  %p1020_p12 = por %p1019_p11, %p1018_p10 }
  0x37   : > { %318 = vmatpush.bf16.msra.mxu0 %v811_v3  ;;  %p1016_p9 = pneg %p1015_p8 }
  0x39   : > { %p1021_p13 = pnand %p1020_p12, %p1016_p9 }
  0x3a   : > { %799 = vmatmul.msk.bf16.vlgmr.msra.gmra.mxu0 %vm307_vm0, %v810_v4 }
  0xb7   : > { %v320_v6 = vpop.f32.mrf.mxu0 }
  0xb8   : > { %v1257_v7 = vadd.f32 %v906_v5, %v320_v6 }
  0xba   : > { %v325_v8 = vand.u32 2147483647, %v1257_v7  ;;  %v328_v9 = vand.u32 2139095040, %v1257_v7 }
  0xbc   : > { %v329_v10 = vshrl.u32 %v328_v9, 23  ;;  %v332_v11 = vand.u32 8388607, %v325_v8 }
  0xbe   : > { %v800_v12 = vadd.s32 4294967169, %v329_v10  ;;  %v333_v13 = vor.u32 8388608, %v332_v11 }
  0xbf   : > { %v322_v14 = vpop.f32.mrf.mxu0 }
  0xc0   : > { %v335_v15 = vadd.s32 1, %v800_v12  ;;  %v1263_v16 = vadd.f32 %v906_v5, %v322_v14  ;;  %v1265_v17 = vshll.u32 %v333_v13, 8 }
  0xc2   : > { %vm336_vm1 = vcmp.gt.s32.totalorder %v335_v15, 0  ;;  %v479_v19 = vand.u32 2147483647, %v1263_v16  ;;  %v482_v20 = vand.u32 2139095040, %v1263_v16  ;;  %v374_v23 = vand.u32 65535, %v1265_v17 }
  0xc3   : > { %v337_v18 = vsel %vm336_vm1, %v335_v15, 0  ;;  %v375_v24 = vshrl.u32 %v1265_v17, 16 }
  0xc4   : > { %v339_v21 = vand.u32 31, %v337_v18  ;;  %v483_v25 = vshrl.u32 %v482_v20, 23  ;;  %v338_v26 = vshrl.u32 %v337_v18, 5  ;;  %v1275_v31 = vand.u32 8388607, %v479_v19 }
  0xc6   : > { %v340_v22 = vsub.s32 32, %v339_v21  ;;  %v342_v28 = vshll.u32 %v1089_v27, %v339_v21  ;;  %v345_v30 = vshll.u32 %v1090_v29, %v339_v21  ;;  %v348_v35 = vshll.u32 %v1091_v33, %v339_v21 }
  0xc7   : > { %v351_v38 = vshll.u32 %v1092_v36, %v339_v21  ;;  %v354_v41 = vshll.u32 %v1093_v39, %v339_v21  ;;  %v803_v47 = vadd.s32 4294967169, %v483_v25  ;;  %vm357_vm2 = vcmp.lt.s32.totalorder %v338_v26, 1 }
  0xc8   : > { %v343_v32 = vshrl.u32 %v1090_v29, %v340_v22  ;;  %v346_v34 = vshrl.u32 %v1091_v33, %v340_v22  ;;  %v349_v37 = vshrl.u32 %v1092_v36, %v340_v22  ;;  %v352_v40 = vshrl.u32 %v1093_v39, %v340_v22 }
  0xc9   : > { %v355_v43 = vshrl.u32 %v1094_v42, %v340_v22  ;;  %vm360_vm3 = vcmp.lt.s32.totalorder %v338_v26, 4  ;;  %v341_v50 = vshrl.u32 %v1089_v27, %v340_v22  ;;  %vm359_vm4 = vcmp.lt.s32.totalorder %v338_v26, 3 }
  0xca   : > { %v344_v44 = vor.u32 %v343_v32, %v342_v28  ;;  %v347_v45 = vor.u32 %v346_v34, %v345_v30  ;;  %v350_v46 = vor.u32 %v349_v37, %v348_v35  ;;  %v353_v48 = vor.u32 %v352_v40, %v351_v38 }
  0xcb   : > { %v356_v49 = vor.u32 %v355_v43, %v354_v41  ;;  %v489_v56 = vadd.s32 1, %v803_v47  ;;  %vm358_vm5 = vcmp.lt.s32.totalorder %v338_v26, 2  ;;  %v487_v3 = vor.u32 8388608, %v1275_v31 }
  0xcc   : > { %v362_v51 = vsel %vm360_vm3, %v350_v46, 2102212464  ;;  %v365_v52 = vsel %vm357_vm2, %v344_v44, %v347_v45  ;;  %v369_v53 = vsel %vm357_vm2, %v347_v45, %v350_v46  ;;  %v366_v54 = vsel %vm360_vm3, %v353_v48, 920167782 }
  0xcd   : > { %v370_v55 = vsel %vm360_vm3, %v356_v49, 1326507024  ;;  %v361_v57 = vsel %vm357_vm2, %v341_v50, %v344_v44  ;;  %v367_v58 = vsel %vm359_vm4, %v350_v46, %v366_v54  ;;  %v363_v60 = vsel %vm359_vm4, %v347_v45, %v362_v51 }
  0xce   : > { %v371_v59 = vsel %vm359_vm4, %v353_v48, %v370_v55  ;;  %v368_v61 = vsel %vm358_vm5, %v365_v52, %v367_v58  ;;  %vm490_vm6 = vcmp.gt.s32.totalorder %v489_v56, 0  ;;  %v1287_v4 = vsel %vm358_vm5, %v361_v57, %v363_v60 }
  0xcf   : > { %v372_v62 = vsel %vm358_vm5, %v369_v53, %v371_v59  ;;  %v398_v1 = vand.u32 65535, %v368_v61  ;;  %v399_v2 = vshrl.u32 %v368_v61, 16  ;;  %v491_v9 = vsel %vm490_vm6, %v489_v56, 0 }
  0xd0   : > { %v376_v63 = vand.u32 65535, %v372_v62  ;;  %v377_v0 = vshrl.u32 %v372_v62, 16  ;;  %v493_v31 = vand.u32 31, %v491_v9  ;;  %v1095_v32 = vmov 0  }
  0xd1   : > { %v401_v12 = vmul.u32 %v399_v2, %v374_v23  ;;  %v402_v13 = vmul.u32 %v398_v1, %v375_v24  ;;  %v400_v18 = vmul.u32 %v398_v1, %v374_v23  ;;  %v403_v20 = vmul.u32 %v399_v2, %v375_v24 }
  0xd2   : > { %v379_v5 = vmul.u32 %v377_v0, %v374_v23  ;;  %v380_v6 = vmul.u32 %v376_v63, %v375_v24  ;;  %v378_v10 = vmul.u32 %v376_v63, %v374_v23  ;;  %v381_v11 = vmul.u32 %v377_v0, %v375_v24 }
  0xd3   : > { %v404_v25 = vshll.u32 %v401_v12, 16  ;;  %v405_v26 = vshrl.u32 %v401_v12, 16  ;;  %v406_v30 = vshll.u32 %v402_v13, 16  ;;  %v407_v35 = vshrl.u32 %v402_v13, 16 }
  0xd4   : > { %v382_v14 = vshll.u32 %v379_v5, 16  ;;  %v383_v15 = vshrl.u32 %v379_v5, 16  ;;  %v384_v21 = vshll.u32 %v380_v6, 16  ;;  %v385_v22 = vshrl.u32 %v380_v6, 16 }
  0xd5   : > { %vm408_vm8 = vc.u32 %v400_v18, %v404_v25  ;;  %v410_v37 = vadd.s32 %v404_v25, %v400_v18  ;;  %v1291_v23 = vsub.s32 32, %v493_v31  ;;  %v1294_v43 = vshrl.u32 %v491_v9, 5 }
  0xd6   : > { %vm386_vm7 = vc.u32 %v378_v10, %v382_v14  ;;  %v388_v28 = vadd.s32 %v382_v14, %v378_v10  ;;  %v409_v40 = vsel %vm408_vm8, 1, %v1095_v32  ;;  %v496_v47 = vshll.u32 %v1089_v27, %v493_v31 }
  0xd7   : > { %v387_v34 = vsel %vm386_vm7, 1, %v1095_v32  ;;  %v411_v41 = vadd.s32 %v409_v40, %v403_v20  ;;  %vm412_vm10 = vc.u32 %v410_v37, %v406_v30  ;;  %v1297_v46 = vadd.s32 %v410_v37, %v406_v30 }
  0xd8   : > { %v389_v38 = vadd.s32 %v387_v34, %v381_v11  ;;  %vm390_vm9 = vc.u32 %v388_v28, %v384_v21  ;;  %v413_v45 = vsel %vm412_vm10, 1, %v1095_v32  ;;  %v497_v49 = vshrl.u32 %v1090_v29, %v1291_v23 }
  0xd9   : > { %v391_v24 = vsel %vm390_vm9, 1, %v1095_v32  ;;  %v415_v48 = vadd.s32 %v413_v45, %v411_v41  ;;  %v499_v50 = vshll.u32 %v1090_v29, %v493_v31  ;;  %v500_v51 = vshrl.u32 %v1091_v33, %v1291_v23 }
  0xda   : > { %v393_v44 = vadd.s32 %v391_v24, %v389_v38  ;;  %v502_v53 = vshll.u32 %v1091_v33, %v493_v31  ;;  %v503_v54 = vshrl.u32 %v1092_v36, %v1291_v23  ;;  %v505_v55 = vshll.u32 %v1092_v36, %v493_v31 }
  0xdb   : > { %v416_v56 = vadd.s32 %v415_v48, %v405_v26  ;;  %v1309_v57 = vor.u32 %v497_v49, %v496_v47  ;;  %v1311_v58 = vor.u32 %v500_v51, %v499_v50  ;;  %v506_v59 = vshrl.u32 %v1093_v39, %v1291_v23 }
  0xdc   : > { %v394_v52 = vadd.s32 %v393_v44, %v383_v15  ;;  %v504_v60 = vor.u32 %v503_v54, %v502_v53  ;;  %v508_v61 = vshll.u32 %v1093_v39, %v493_v31  ;;  %v509_v33 = vshrl.u32 %v1094_v42, %v1291_v23 }
  0xdd   : > { %v417_v62 = vadd.s32 %v416_v56, %v407_v35  ;;  %v507_v63 = vor.u32 %v506_v59, %v505_v55  ;;  %vm511_vm12 = vcmp.lt.s32.totalorder %v1294_v43, 1  ;;  %v1323_v0 = vshll.u32 %v487_v3, 8 }
  0xde   : > { %v1315_v29 = vadd.s32 %v394_v52, %v385_v22  ;;  %v510_v36 = vor.u32 %v509_v33, %v508_v61  ;;  %v418_v1 = vmul.u32 %v1265_v17, %v1287_v4  ;;  %vm514_vm13 = vcmp.lt.s32.totalorder %v1294_v43, 4 }
  0xdf   : > { %v421_v2 = vadd.s32 1, %v417_v62  ;;  %v519_v39 = vsel %vm511_vm12, %v1309_v57, %v1311_v58  ;;  %vm513_vm14 = vcmp.lt.s32.totalorder %v1294_v43, 3  ;;  %v520_v42 = vsel %vm514_vm13, %v507_v63, 920167782 }
  0xe0   : > { %vm420_vm11 = vc.u32 %v1315_v29, %v1297_v46  ;;  %v523_v3 = vsel %vm511_vm12, %v1311_v58, %v504_v60  ;;  %v524_v17 = vsel %vm514_vm13, %v510_v36, 1326507024  ;;  %vm512_vm15 = vcmp.lt.s32.totalorder %v1294_v43, 2 }
  0xe1   : > { %v422_v4 = vsel %vm420_vm11, %v421_v2, %v417_v62  ;;  %v521_v5 = vsel %vm513_vm14, %v504_v60, %v520_v42  ;;  %v525_v6 = vsel %vm513_vm14, %v507_v63, %v524_v17  ;;  %v528_v12 = vand.u32 65535, %v1323_v0 }
  0xe2   : > { %v423_v9 = vadd.s32 %v422_v4, %v418_v1  ;;  %v522_v10 = vsel %vm512_vm15, %v519_v39, %v521_v5  ;;  %v526_v11 = vsel %vm512_vm15, %v523_v3, %v525_v6  ;;  %v529_v13 = vshrl.u32 %v1323_v0, 16 }
  0xe3   : > { %v530_v14 = vand.u32 65535, %v526_v11  ;;  %v531_v15 = vshrl.u32 %v526_v11, 16  ;;  %v553_v18 = vshrl.u32 %v522_v10, 16  ;;  %v552_v21 = vand.u32 65535, %v522_v10 }
  0xe4   : > { %v424_v20 = vadd.s32 536870912, %v423_v9  ;;  %v516_v59 = vsel %vm514_vm13, %v504_v60, 2102212464  ;;  %v495_v63 = vshrl.u32 %v1089_v27, %v1291_v23  ;;  %v419_v27 = vadd.s32 %v1297_v46, %v1315_v29 }
  0xe5   : > { %v533_v22 = vmul.u32 %v531_v15, %v528_v12  ;;  %v534_v25 = vmul.u32 %v530_v14, %v529_v13  ;;  %v555_v28 = vmul.u32 %v553_v18, %v528_v12  ;;  %v532_v30 = vmul.u32 %v530_v14, %v528_v12 }
  0xe6   : > { %v1351_v26 = vshrl.u32 %v424_v20, 30  ;;  %v535_v35 = vmul.u32 %v531_v15, %v529_v13  ;;  %v554_v37 = vmul.u32 %v552_v21, %v528_v12  ;;  %v556_v41 = vmul.u32 %v552_v21, %v529_v13 }
  0xe7   : > { %v536_v31 = vshll.u32 %v533_v22, 16  ;;  %v558_v38 = vshll.u32 %v555_v28, 16  ;;  %v538_v40 = vshll.u32 %v534_v25, 16  ;;  %v537_v47 = vshrl.u32 %v533_v22, 16 }
  0xe8   : > { %v426_v34 = vshll.u32 %v1351_v26, 30  ;;  %v557_v51 = vmul.u32 %v553_v18, %v529_v13  ;;  %v560_v53 = vshll.u32 %v556_v41, 16  ;;  %v539_v36 = vshrl.u32 %v534_v25, 16 }
  0xe9   : > { %vm540_vm0 = vc.u32 %v532_v30, %v536_v31  ;;  %v542_v24 = vadd.s32 %v536_v31, %v532_v30  ;;  %vm562_vm2 = vc.u32 %v554_v37, %v558_v38  ;;  %v564_v55 = vadd.s32 %v558_v38, %v554_v37 }
  0xea   : > { %v427_v44 = vsub.s32 %v423_v9, %v426_v34  ;;  %v541_v45 = vsel %vm540_vm0, 1, %v1095_v32  ;;  %v563_v54 = vsel %vm562_vm2, 1, %v1095_v32  ;;  %v559_v39 = vshrl.u32 %v555_v28, 16 }
  0xeb   : > { %v543_v48 = vadd.s32 %v541_v45, %v535_v35  ;;  %vm544_vm1 = vc.u32 %v542_v24, %v538_v40  ;;  %v565_v62 = vadd.s32 %v563_v54, %v557_v51  ;;  %vm566_vm4 = vc.u32 %v564_v55, %v560_v53 }
  0xec   : > { %vm428_vm3 = vcmp.lt.s32.totalorder %v427_v44, 0  ;;  %v429_v49 = vsub.s32 0, %v427_v44  ;;  %v545_v50 = vsel %vm544_vm1, 1, %v1095_v32  ;;  %v567_v1 = vsel %vm566_vm4, 1, %v1095_v32 }
  0xed   : > { %v547_v52 = vadd.s32 %v545_v50, %v543_v48  ;;  %v569_v42 = vadd.s32 %v567_v1, %v565_v62  ;;  %v515_v3 = vsel %vm511_vm12, %v495_v63, %v1309_v57  ;;  %v517_v60 = vsel %vm513_vm14, %v1311_v58, %v516_v59 }
  0xee   : > { %v430_v56 = vsel %vm428_vm3, %v429_v49, %v427_v44  ;;  %v561_v4 = vshrl.u32 %v556_v41, 16  ;;  %v568_v32 = vadd.s32 %v564_v55, %v560_v53  ;;  %v518_v10 = vsel %vm512_vm15, %v515_v3, %v517_v60 }
  0xef   : > { %v431_v61 = vclz %v430_v56  ;;  %v548_v33 = vadd.s32 %v547_v52, %v537_v47  ;;  %v570_v5 = vadd.s32 %v569_v42, %v559_v39  ;;  %v572_v14 = vmul.u32 %v1323_v0, %v518_v10 }
  0xf0   : > { %vm327_vm7 = vcmp.lt.s32.totalorder %v1257_v7, 0  ;;  %vm1379_vm8 = vcmp.le.f32.partialorder %v325_v8, 0.7853982  ;;  %v449_v47 = vsub.s32 4, %v1351_v26  ;;  %vm468_vm14 = vweird.f32 %v1257_v7 }
  0xf1   : > { %v801_v2 = vadd.s32 4294967294, %v431_v61  ;;  %v549_v17 = vadd.s32 %v548_v33, %v539_v36  ;;  %v571_v11 = vadd.s32 %v570_v5, %v561_v4  ;;  %vm481_vm15 = vcmp.lt.s32.totalorder %v1263_v16, 0 }
  0xf2   : > { %v450_v52 = vsel %vm327_vm7, %v449_v47, %v1351_v26  ;;  %vm1402_vm0 = vcmp.le.f32.partialorder %v479_v19, 0.7853982  ;;  %vm622_vm4 = vweird.f32 %v1263_v16 }
  0xf3   : > { %vm802_vm5 = vcmp.lt.s32.totalorder %v801_v2, 0  ;;  %vm574_vm6 = vc.u32 %v549_v17, %v568_v32  ;;  %v575_v58 = vadd.s32 1, %v571_v11  ;;  %v573_v56 = vadd.s32 %v568_v32, %v549_v17 }
  0xf4   : > { %v434_v23 = vsel %vm802_vm5, 0, %v801_v2  ;;  %v452_v33 = vsel %vm1379_vm8, 0, %v450_v52 }
  0xf5   : > { %v435_v6 = vsub.s32 32, %v434_v23  ;;  %v439_v9 = vsub.s32 4294967266, %v434_v23  ;;  %v436_v57 = vshll.u32 %v427_v44, %v434_v23  ;;  %v576_v20 = vsel %vm574_vm6, %v575_v58, %v571_v11 }
  0xf6   : > { %v577_v21 = vadd.s32 %v576_v20, %v572_v14  ;;  %v469_v3 = vand.u32 3, %v452_v33 }
  0xf7   : > { %v437_v12 = vshrl.u32 %v419_v27, %v435_v6  ;;  %v440_v13 = vadd.s32 127, %v439_v9 }
  0xf8   : > { %v578_v29 = vadd.s32 536870912, %v577_v21  ;;  %vm471_vm11 = vcmp.eq.s32.totalorder %v469_v3, 0  ;;  %vm474_vm12 = vcmp.eq.s32.totalorder %v469_v3, 2  ;;  %vm470_vm13 = vcmp.lt.s32.totalorder %v469_v3, 2 }
  0xf9   : > { %v438_v15 = vor.u32 %v437_v12, %v436_v57  ;;  %v441_v18 = vshll.u32 %v440_v13, 23 }
  0xfa   : > { %v1373_v28 = vshrl.u32 %v578_v29, 30 }
  0xfb   : > { %v442_v46 = vor.u32 4788187, %v441_v18  ;;  %v445_v25 = vcvt.s32.f32 %v438_v15 }
  0xfc   : > { %v580_v30 = vshll.u32 %v1373_v28, 30 }
  0xfd   : > { %v443_v22 = vand.u32 2147483647, %v442_v46 }
  0xfe   : > { %v581_v34 = vsub.s32 %v577_v21, %v580_v30  ;;  %v603_v21 = vsub.s32 4, %v1373_v28 }
  0xff   : > { %v446_v43 = vmul.f32 %v445_v25, %v443_v22 }
 0x100   : > { %vm582_vm9 = vcmp.lt.s32.totalorder %v581_v34, 0  ;;  %v583_v38 = vsub.s32 0, %v581_v34  ;;  %v604_v19 = vsel %vm481_vm15, %v603_v21, %v1373_v28 }
 0x101   : > { %v447_v31 = vxor.u32 2147483648, %v446_v43 }
 0x102   : > { %v584_v24 = vsel %vm582_vm9, %v583_v38, %v581_v34 }
 0x103   : > { %v448_v35 = vsel %vm327_vm7, %v447_v31, %v446_v43  ;;  %v585_v45 = vclz %v584_v24  ;;  %v606_v31 = vsel %vm1402_vm0, 0, %v604_v19 }
 0x104   : > { %v451_v37 = vsel %vm1379_vm8, %v1257_v7, %v448_v35  ;;  %v623_v38 = vand.u32 3, %v606_v31 }
 0x105   : > { %v453_v40 = vmul.f32 %v451_v37, %v451_v37  ;;  %v804_v49 = vadd.s32 4294967294, %v585_v45 }
 0x106   : > { %vm625_vm1 = vcmp.eq.s32.totalorder %v623_v38, 0  ;;  %vm628_vm2 = vcmp.eq.s32.totalorder %v623_v38, 2  ;;  %vm624_vm3 = vcmp.lt.s32.totalorder %v623_v38, 2 }
 0x107   : > { %v454_v41 = vmul.f32 -0.001358992, %v453_v40  ;;  %v461_v44 = vmul.f32 -0.00019511016, %v453_v40  ;;  %vm805_vm10 = vcmp.lt.s32.totalorder %v804_v49, 0 }
 0x108   : > { %v588_v53 = vsel %vm805_vm10, 0, %v804_v49 }
 0x109   : > { %v455_v8 = vadd.f32 0.041655596, %v454_v41  ;;  %v462_v48 = vadd.f32 0.008332121, %v461_v44  ;;  %v589_v59 = vsub.s32 32, %v588_v53  ;;  %v593_v61 = vsub.s32 4294967266, %v588_v53 }
 0x10a   : > { %v590_v1 = vshll.u32 %v581_v34, %v588_v53 }
 0x10b   : > { %v456_v50 = vmul.f32 %v455_v8, %v453_v40  ;;  %v463_v51 = vmul.f32 %v462_v48, %v453_v40  ;;  %v591_v36 = vshrl.u32 %v573_v56, %v589_v59  ;;  %v594_v2 = vadd.s32 127, %v593_v61 }
 0x10d   : > { %v457_v54 = vadd.f32 -0.4999988, %v456_v50  ;;  %v464_v55 = vadd.f32 -0.16666654, %v463_v51  ;;  %v592_v60 = vor.u32 %v591_v36, %v590_v1  ;;  %v595_v26 = vshll.u32 %v594_v2, 23 }
 0x10f   : > { %v458_v62 = vmul.f32 %v457_v54, %v453_v40  ;;  %v465_v63 = vmul.f32 %v464_v55, %v453_v40  ;;  %v596_v27 = vor.u32 4788187, %v595_v26  ;;  %v599_v32 = vcvt.s32.f32 %v592_v60 }
 0x111   : > { %v459_v39 = vadd.f32 1.0, %v458_v62  ;;  %v466_v42 = vadd.f32 1.0, %v465_v63  ;;  %v597_v23 = vand.u32 2147483647, %v596_v27 }
 0x113   : > { %v467_v4 = vmul.f32 %v466_v42, %v451_v37  ;;  %v475_v5 = vxor.u32 2147483648, %v459_v39  ;;  %v600_v11 = vmul.f32 %v599_v32, %v597_v23 }
 0x115   : > { %v472_v17 = vxor.u32 2147483648, %v467_v4  ;;  %v476_v9 = vsel %vm474_vm12, %v475_v5, %v467_v4  ;;  %v601_v13 = vxor.u32 2147483648, %v600_v11 }
 0x117   : > { %v473_v6 = vsel %vm471_vm11, %v459_v39, %v472_v17  ;;  %v602_v14 = vsel %vm481_vm15, %v601_v13, %v600_v11 }
 0x118   : > { %v477_v10 = vsel %vm470_vm13, %v473_v6, %v476_v9  ;;  %v605_v7 = vsel %vm1402_vm0, %v1263_v16, %v602_v14 }
 0x119   : > { %v478_v57 = vsel %vm468_vm14, nan, %v477_v10  ;;  %v607_v15 = vmul.f32 %v605_v7, %v605_v7 }
 0x11a   : > { %v633_v12 = vmul.f32 0.088388346, %v478_v57 }
 0x11b   : > { %v608_v18 = vmul.f32 -0.001358992, %v607_v15  ;;  %v615_v20 = vmul.f32 -0.00019511016, %v607_v15 }
 0x11c   : > { %635 = vst [vmem:[%s1397_s11] sm:$0xff] %v633_v12 }
 0x11d   : > { %v609_v46 = vadd.f32 0.041655596, %v608_v18  ;;  %v616_v29 = vadd.f32 0.008332121, %v615_v20 }
 0x11f   : > { %v610_v22 = vmul.f32 %v609_v46, %v607_v15  ;;  %v617_v25 = vmul.f32 %v616_v29, %v607_v15 }
 0x121   : > { %v611_v43 = vadd.f32 -0.4999988, %v610_v22  ;;  %v618_v30 = vadd.f32 -0.16666654, %v617_v25 }
 0x123   : > { %v612_v34 = vmul.f32 %v611_v43, %v607_v15  ;;  %v619_v0 = vmul.f32 %v618_v30, %v607_v15 }
 0x125   : > { %v613_v35 = vadd.f32 1.0, %v612_v34  ;;  %v620_v37 = vadd.f32 1.0, %v619_v0 }
 0x127   : > { %v621_v40 = vmul.f32 %v620_v37, %v605_v7  ;;  %v629_v24 = vxor.u32 2147483648, %v613_v35 }
 0x129   : > { %v626_v28 = vxor.u32 2147483648, %v621_v40  ;;  %v630_v44 = vsel %vm628_vm2, %v629_v24, %v621_v40 }
 0x12b   : > { %v627_v41 = vsel %vm625_vm1, %v613_v35, %v626_v28 }
 0x12c   : > { %v631_v45 = vsel %vm624_vm3, %v627_v41, %v630_v44 }
 0x12d   : > { %v632_v47 = vsel %vm622_vm4, nan, %v631_v45 }
 0x12e   : > { %v634_v8 = vmul.f32 0.088388346, %v632_v47 }
 0x130   : > { %636 = vst [vmem:[%s1397_s11 + $0x8] sm:$0xff] %v634_v8 }
 0x131   : > { %1024 = shalt.err (!%p1021_p13)
}
 0x132   : > { %s1096_s29 = smov 128   ;;  %s1097_s7 = smov 256  }
 0x133   : > { %s1098_s10 = smov 8  }
 0x134   : > { %823 = dma.vmem_to_hbm [thread:$0]  (%p1209_p0), %s653_s5, 256, %s655_s8, %s638_s15, %s1096_s29, %s1097_s7, %s1098_s10  }
 0x135 PF: > { %s669_s11 = sand.u32 1, %s1063_s12   ;;  %p837_p3 = pnand %p772_p4, %p1213_p2 }
 0x136   : > { %s670_s20 = scalar_lea.sflag [#allocation4], %s669_s11 }
 0x137   : > { %p838_p5 = pneg %p837_p3 }
 0x139   : > { %1058 = dma.done.wait (%p838_p5), %s670_s20, 256  }
 0x13a   : > { %1060 = vsyncadd (%p838_p5), %s670_s20, 4294967040  ;;  %s20_s17 = sadd.s32 1, %s1083_s17   ;;  %s1468_s12 = smov %s1067_s13 }
 0x13b   : > { %p17_p1 = scmp.ge.s32.totalorder %s20_s17, 4   ;;  %s1469_s13 = smov %s1071_s14 }
 0x13c   : > { %s1470_s14 = smov %s1170_s24  ;;  %s1471_s15 = smov %s1079_s16 }
 0x13d   : > { %s1472_s16 = smov %s1474_s18  ;;  %19 = sbr.rel (!%p17_p1) target bundleno = 7 (0x7), region = 94 }
 0x142   :  { %676 = vsyncpa [#allocation3], 1 }
 0x143   :  { %678 = vsyncpa [#allocation3 + $0x1], 1 }
 0x144   :  { %679 = vsyncpa [#allocation6], 1 }
 0x145   :  { %681 = vsyncpa [#allocation6 + $0x1], 1 }
 0x146   :  { %682 = vsyncpa [#allocation4], 1 }
 0x147   :  { %684 = vsyncpa [#allocation4 + $0x1], 1 }

</bundles_post_ra>
